<compile_context>
chip_gen: v5e
topology: v5e:2x2
jax: 0.10.0
libtpu: 0.0.40
codegen_flags: <defaults>
</compile_context>

<pallas_src>
import functools

import numpy as np

import jax
import jax.numpy as jnp
from jax.experimental import pallas as pl
from jax.experimental.pallas import tpu as pltpu

KSIZE = 7
PAD = KSIZE // 2
_LANE = 128


def _round_up(x, m):
    return (x + m - 1) // m * m


def _divisors(n):
    return [d for d in range(1, n + 1) if n % d == 0]


def _vmem_capacity_bytes():
    """Per-core VMEM capacity; conservative (v7x) fallback if unqueryable."""
    try:
        info = pltpu.get_tpu_info()
        cap = int(getattr(info, "vmem_capacity_bytes", 0))
        if cap > 0:
            return cap
    except Exception:
        pass
    return 64 * 1024 * 1024


def _conv_structure(H, W, hw_pad):
    """Static sparsity pattern of the conv-as-matmul matrix.

    Returns (idx, valid), both (2*hw_pad, hw_pad):
      idx[r, c]   = flat index into weight.reshape(2*K*K) of the tap linking
                    flattened input position r (avg half first, max half at
                    offset hw_pad) to flattened output position c.
      valid[r, c] = 1.0 where such a link exists (the conv's zero padding and
                    the hw->hw_pad padding supply zeros elsewhere).
    """
    hw = H * W
    rows = np.repeat(np.arange(H), W)
    cols = np.tile(np.arange(W), H)
    out_idx = np.arange(hw)
    idx = np.zeros((2 * hw_pad, hw_pad), np.int32)
    valid = np.zeros((2 * hw_pad, hw_pad), np.float32)
    for dy in range(KSIZE):
        for dx in range(KSIZE):
            ri = rows + dy - PAD
            ci = cols + dx - PAD
            ok = (ri >= 0) & (ri < H) & (ci >= 0) & (ci < W)
            in_i = (ri * W + ci)[ok]
            out_i = out_idx[ok]
            t = dy * KSIZE + dx
            idx[in_i, out_i] = t                            # avg channel taps
            valid[in_i, out_i] = 1.0
            idx[hw_pad + in_i, out_i] = KSIZE * KSIZE + t   # max channel taps
            valid[hw_pad + in_i, out_i] = 1.0
    return idx, valid


def _pick_blocks(N, C, hw_pad, x_itemsize, out_itemsize, budget_bytes):
    """Choose (batch block nb, channel block c_blk, est. per-step VMEM)."""
    fixed = 2 * (2 * hw_pad) * hw_pad * 4            # conv matrix, 2 buffers

    def step_bytes(nb, cb):
        return (fixed
                + 2 * nb * cb * hw_pad * x_itemsize  # x block (double-buffered)
                + 2 * nb * hw_pad * out_itemsize     # out block (double-buffered)
                + 2 * nb * hw_pad * 4                # sum / max scratch
                + 10 * nb * hw_pad * 4)              # f32 temps (cat, y, chunks)

    # Batch block: multiple of 8 dividing N (full-sublane output stores), or N.
    nb_cands = sorted({d for d in _divisors(N) if d % 8 == 0} | {N})
    two_step = [d for d in nb_cands if N // d >= 2]
    pool = two_step if two_step else nb_cands        # prefer >=2 grid steps
    nb = min(pool)
    for cand in sorted(pool, reverse=True):
        if step_bytes(cand, 1) <= budget_bytes:
            nb = cand
            break

    # Channel block: multiple of 8 dividing C, or C itself; keep the in-kernel
    # reduction unroll bounded by preferring chunks <= 512.
    cc_cands = {d for d in _divisors(C) if d % 8 == 0} | {C}
    small = sorted((d for d in cc_cands if d <= 512), reverse=True)
    order = small if small else sorted(cc_cands, reverse=True)
    c_blk = min(cc_cands)
    for cand in order:
        if step_bytes(nb, cand) <= budget_bytes:
            c_blk = cand
            break
    return nb, c_blk, step_bytes(nb, c_blk)


def spatial_attention_kernel(a_ref, x_ref, o_ref, sum_sc, max_sc, *, C,
                             inner_chunk=8):
    # a_ref:   VMEM (2*hw_pad, hw_pad) f32 conv-as-matmul matrix (constant).
    # x_ref:   VMEM (nb, c_blk, hw_pad) lane-dense input block.
    # o_ref:   VMEM (nb, hw_pad)        lane-dense attention-map block.
    # sum_sc / max_sc: VMEM (nb, hw_pad) f32 running channel sum / max.
    c_step = pl.program_id(1)
    last = pl.num_programs(1) - 1

    @pl.when(c_step == 0)
    def _():
        sum_sc[...] = jnp.zeros_like(sum_sc)
        max_sc[...] = jnp.full_like(max_sc, -jnp.inf)

    nb, c_blk, hw = x_ref.shape

    # Chunked channel reduction: running f32 sum + native-dtype max over small
    # sub-chunks, so the block is never upcast to f32 as a whole.
    s = jnp.zeros((nb, hw), jnp.float32)
    m = jnp.full((nb, hw), -jnp.inf, jnp.float32)
    c0 = 0
    while c0 < c_blk:                                 # static unroll
        cc = min(inner_chunk, c_blk - c0)
        xb = x_ref[:, pl.ds(c0, cc), :]
        s = s + jnp.sum(xb.astype(jnp.float32), axis=1)
        m = jnp.maximum(m, jnp.max(xb, axis=1).astype(jnp.float32))
        c0 += cc
    sum_sc[...] = sum_sc[...] + s
    max_sc[...] = jnp.maximum(max_sc[...], m)

    @pl.when(c_step == last)
    def _():
        avg = sum_sc[...] * (1.0 / C)                 # == torch.mean(dim=1)
        mx = max_sc[...]                              # == torch.max(dim=1)
        cat = jnp.concatenate([avg, mx], axis=-1)     # (nb, 2*hw_pad)
        y = jnp.dot(cat, a_ref[...], preferred_element_type=jnp.float32)
        o_ref[...] = jax.nn.sigmoid(y).astype(o_ref.dtype)


def spatial_attention(x, weight):
    """x: (N, C, H, W); weight: (1, 2, KSIZE, KSIZE) conv1 weight (no bias)."""
    N, C, H, W = x.shape
    hw = H * W
    hw_pad = _round_up(hw, _LANE)

    # Conv-as-matmul matrix, built from the static geometry and the weights.
    idx, valid = _conv_structure(H, W, hw_pad)
    w_flat = weight.astype(jnp.float32).reshape(-1)               # (2*K*K,)
    a_mat = jnp.asarray(valid) * w_flat[jnp.asarray(idx)]         # (2*hw_pad, hw_pad)

    x_flat = x.reshape(N, C, hw)                                  # free (NCHW)
    if hw_pad != hw:
        x_flat = jnp.pad(x_flat, ((0, 0), (0, 0), (0, hw_pad - hw)))

    cap = _vmem_capacity_bytes()
    budget = max(16 << 20, cap // 3)                  # ~21 MiB v7x, ~42 MiB v5e/v6e
    nb, c_blk, est = _pick_blocks(N, C, hw_pad, x.dtype.itemsize,
                                  x.dtype.itemsize, budget)
    vmem_limit = int(min(cap, max(int(cap * 0.75), est + (2 << 20))))

    kern = functools.partial(spatial_attention_kernel, C=C)

    out_flat = pl.pallas_call(
        kern,
        out_shape=jax.ShapeDtypeStruct((N, hw_pad), x.dtype),
        grid_spec=pltpu.PrefetchScalarGridSpec(
            num_scalar_prefetch=0,
            grid=(N // nb, C // c_blk),
            in_specs=[
                # Conv matrix: same block every step -> resident in VMEM.
                pl.BlockSpec((2 * hw_pad, hw_pad), lambda g, c: (0, 0)),
                # Lane-dense (batch-block, channel-block) slab of the input.
                pl.BlockSpec((nb, c_blk, hw_pad), lambda g, c: (g, c, 0)),
            ],
            out_specs=pl.BlockSpec((nb, hw_pad), lambda g, c: (g, 0)),
            scratch_shapes=[pltpu.VMEM((nb, hw_pad), jnp.float32),
                            pltpu.VMEM((nb, hw_pad), jnp.float32)],
        ),
        compiler_params=pltpu.CompilerParams(
            dimension_semantics=("parallel", "arbitrary"),
            vmem_limit_bytes=vmem_limit),
    )(a_mat, x_flat)

    out = out_flat[:, :hw] if hw_pad != hw else out_flat
    return out.reshape(N, 1, H, W)


def spatial_attention_reference(x, weight):
    avg = jnp.mean(x, axis=1, keepdims=True)
    mx = jnp.max(x, axis=1, keepdims=True)
    cat = jnp.concatenate([avg, mx], axis=1)
    y = jax.lax.conv_general_dilated(
        cat, weight, window_strides=(1, 1),
        padding=((PAD, PAD), (PAD, PAD)),
        dimension_numbers=("NCHW", "OIHW", "NCHW"))
    return jax.nn.sigmoid(y)


if __name__ == "__main__":
    key = jax.random.PRNGKey(0)
    kx, kw = jax.random.split(key)

    N, C, H, W = 2, 4, 16, 16
    x = jax.random.normal(kx, (N, C, H, W), dtype=jnp.float32)

    # Deterministic conv1 weight (1 out-channel, 2 in-channels, 7x7), no bias.
    fan_in = 2 * KSIZE * KSIZE
    bound = float(1.0 / np.sqrt(fan_in))
    weight = jax.random.uniform(
        kw, (1, 2, KSIZE, KSIZE), dtype=jnp.float32, minval=-bound, maxval=bound)

    out = jax.block_until_ready(spatial_attention(x, weight))

    ref = spatial_attention_reference(x, weight)
    assert out.shape == (N, 1, H, W)
    assert jnp.allclose(out, ref, atol=1e-5, rtol=1e-5), "mismatch vs reference"

    print("KERNEL_OK")
</pallas_src>

<mosaic_0001>
module attributes {stable_mosaic.version = 11 : i64} {
  func.func @spatial_attention_kernel(%arg0: i32, %arg1: i32, %arg2: memref<512x256xf32, #tpu.memory_space<vmem>>, %arg3: memref<2x4x256xf32, #tpu.memory_space<vmem>>, %arg4: memref<2x256xf32, #tpu.memory_space<vmem>>, %arg5: memref<2x256xf32, #tpu.memory_space<vmem>>, %arg6: memref<2x256xf32, #tpu.memory_space<vmem>>) attributes {dimension_semantics = [#tpu.dimension_semantics<parallel>, #tpu.dimension_semantics<arbitrary>], iteration_bounds = array<i64: 1, 1>, scalar_prefetch = 0 : i64, scratch_operands = 2 : i64, tpu.core_type = #tpu.core_type<tc>, window_params = [{pipeline_mode = #tpu.pipeline_mode<synchronous>, transform_indices = @transform_0, window_bounds = array<i64: 512, 256>}, {transform_indices = @transform_1, window_bounds = array<i64: 2, 4, 256>}, {transform_indices = @transform_2, window_bounds = array<i64: 2, 256>}]} {
    %c0_i32 = arith.constant 0 : i32
    %0 = arith.cmpi eq, %arg1, %c0_i32 : i32
    %1 = arith.extui %0 : i1 to i32
    %c0_i32_0 = arith.constant 0 : i32
    %2 = arith.cmpi ne, %1, %c0_i32_0 : i32
    scf.if %2 {
      %cst_16 = arith.constant 0.000000e+00 : f32
      %19 = vector.broadcast %cst_16 : f32 to vector<2x256xf32>
      %c0_17 = arith.constant 0 : index
      %c0_18 = arith.constant 0 : index
      %20 = vector.load %arg5[%c0_17, %c0_18] : memref<2x256xf32, #tpu.memory_space<vmem>>, vector<2x256xf32>
      tpu.vector_store %arg5[%c0_17, %c0_18], %19 {strides = array<i32>} : memref<2x256xf32, #tpu.memory_space<vmem>>, vector<2x256xf32>,
      %cst_19 = arith.constant 0xFF800000 : f32
      %21 = vector.broadcast %cst_19 : f32 to vector<2x256xf32>
      %c0_20 = arith.constant 0 : index
      %c0_21 = arith.constant 0 : index
      %22 = vector.load %arg6[%c0_20, %c0_21] : memref<2x256xf32, #tpu.memory_space<vmem>>, vector<2x256xf32>
      tpu.vector_store %arg6[%c0_20, %c0_21], %21 {strides = array<i32>} : memref<2x256xf32, #tpu.memory_space<vmem>>, vector<2x256xf32>,
    } else {
    }
    %cst = arith.constant 0.000000e+00 : f32
    %3 = vector.broadcast %cst : f32 to vector<2x256xf32>
    %cst_1 = arith.constant 0xFF800000 : f32
    %4 = vector.broadcast %cst_1 : f32 to vector<2x256xf32>
    %c0 = arith.constant 0 : index
    %c0_2 = arith.constant 0 : index
    %c0_3 = arith.constant 0 : index
    %5 = vector.load %arg3[%c0, %c0_2, %c0_3] : memref<2x4x256xf32, #tpu.memory_space<vmem>>, vector<2x4x256xf32>
    %cst_4 = arith.constant dense<0.000000e+00> : vector<2x256xf32>
    %6 = vector.multi_reduction <add>, %5, %cst_4 [1] : vector<2x4x256xf32> to vector<2x256xf32>
    %7 = arith.addf %3, %6 : vector<2x256xf32>
    %cst_5 = arith.constant dense<0xFF800000> : vector<2x256xf32>
    %8 = vector.multi_reduction <maximumf>, %5, %cst_5 [1] : vector<2x4x256xf32> to vector<2x256xf32>
    %9 = arith.maximumf %4, %8 : vector<2x256xf32>
    %c0_6 = arith.constant 0 : index
    %c0_7 = arith.constant 0 : index
    %10 = vector.load %arg5[%c0_6, %c0_7] : memref<2x256xf32, #tpu.memory_space<vmem>>, vector<2x256xf32>
    %11 = arith.addf %10, %7 : vector<2x256xf32>
    %c0_8 = arith.constant 0 : index
    %c0_9 = arith.constant 0 : index
    %12 = vector.load %arg5[%c0_8, %c0_9] : memref<2x256xf32, #tpu.memory_space<vmem>>, vector<2x256xf32>
    tpu.vector_store %arg5[%c0_8, %c0_9], %11 {strides = array<i32>} : memref<2x256xf32, #tpu.memory_space<vmem>>, vector<2x256xf32>,
    %c0_10 = arith.constant 0 : index
    %c0_11 = arith.constant 0 : index
    %13 = vector.load %arg6[%c0_10, %c0_11] : memref<2x256xf32, #tpu.memory_space<vmem>>, vector<2x256xf32>
    %14 = arith.maximumf %13, %9 : vector<2x256xf32>
    %c0_12 = arith.constant 0 : index
    %c0_13 = arith.constant 0 : index
    %15 = vector.load %arg6[%c0_12, %c0_13] : memref<2x256xf32, #tpu.memory_space<vmem>>, vector<2x256xf32>
    tpu.vector_store %arg6[%c0_12, %c0_13], %14 {strides = array<i32>} : memref<2x256xf32, #tpu.memory_space<vmem>>, vector<2x256xf32>,
    %c0_i32_14 = arith.constant 0 : i32
    %16 = arith.cmpi eq, %arg1, %c0_i32_14 : i32
    %17 = arith.extui %16 : i1 to i32
    %c0_i32_15 = arith.constant 0 : i32
    %18 = arith.cmpi ne, %17, %c0_i32_15 : i32
    scf.if %18 {
      %c0_16 = arith.constant 0 : index
      %c0_17 = arith.constant 0 : index
      %19 = vector.load %arg5[%c0_16, %c0_17] : memref<2x256xf32, #tpu.memory_space<vmem>>, vector<2x256xf32>
      %cst_18 = arith.constant 2.500000e-01 : f32
      %20 = vector.broadcast %cst_18 : f32 to vector<2x256xf32>
      %21 = arith.mulf %19, %20 : vector<2x256xf32>
      %c0_19 = arith.constant 0 : index
      %c0_20 = arith.constant 0 : index
      %22 = vector.load %arg6[%c0_19, %c0_20] : memref<2x256xf32, #tpu.memory_space<vmem>>, vector<2x256xf32>
      %23 = tpu.concatenate %21, %22 in 1 : vector<2x256xf32>, vector<2x256xf32> -> vector<2x512xf32>
      %c0_21 = arith.constant 0 : index
      %c0_22 = arith.constant 0 : index
      %24 = vector.load %arg2[%c0_21, %c0_22] : memref<512x256xf32, #tpu.memory_space<vmem>>, vector<512x256xf32>
      %cst_23 = arith.constant dense<0.000000e+00> : vector<2x256xf32>
      %25 = tpu.matmul %23, %24, %cst_23 {dimension_numbers = #tpu.dot_dimension_numbers<[1], [0], [0], [1], [0, 0, 1, 1], [], []>} : vector<2x512xf32>, vector<512x256xf32>, vector<2x256xf32> -> vector<2x256xf32>
      %26 = arith.negf %25 : vector<2x256xf32>
      %27 = math.exp %26 : vector<2x256xf32>
      %cst_24 = arith.constant 1.000000e+00 : f32
      %28 = vector.broadcast %cst_24 : f32 to vector<2x256xf32>
      %29 = arith.addf %28, %27 : vector<2x256xf32>
      %30 = arith.divf %28, %29 : vector<2x256xf32>
      %c0_25 = arith.constant 0 : index
      %c0_26 = arith.constant 0 : index
      %31 = vector.load %arg4[%c0_25, %c0_26] : memref<2x256xf32, #tpu.memory_space<vmem>>, vector<2x256xf32>
      tpu.vector_store %arg4[%c0_25, %c0_26], %30 {strides = array<i32>} : memref<2x256xf32, #tpu.memory_space<vmem>>, vector<2x256xf32>,
    } else {
    }
    return
  }
  func.func @transform_0(%arg0: i32, %arg1: i32) -> (i32, i32) {
    %c0_i32 = arith.constant 0 : i32
    %c0_i32_0 = arith.constant 0 : i32
    %c0_i32_1 = arith.constant 0 : i32
    return %c0_i32, %c0_i32_0 : i32, i32
  }
  func.func @transform_1(%arg0: i32, %arg1: i32) -> (i32, i32, i32) {
    %c0_i32 = arith.constant 0 : i32
    %c0_i32_0 = arith.constant 0 : i32
    return %arg0, %arg1, %c0_i32 : i32, i32, i32
  }
  func.func @transform_2(%arg0: i32, %arg1: i32) -> (i32, i32) {
    %c0_i32 = arith.constant 0 : i32
    %c0_i32_0 = arith.constant 0 : i32
    return %arg0, %c0_i32 : i32, i32
  }
}

</mosaic_0001>

<bundles_post_ra>
// kernel: tpu_custom_call.1
= control target key start
LH: loop header
LB: loop body
LE: loop exit
PB: predicated region body
PF: predicated region fallthrough
CT: control target
= control target key end

     0   :  { %7 = vsyncpa [#allocation5], 0  ;;  %s707_s0 = inlined_call_operand.hbm [shape: f32[512,256], index: 0, kind: input, shape index: {}]   ;;  %s708_s1 = inlined_call_operand.hbm [shape: f32[2,4,256], index: 1, kind: input, shape index: {}]   ;;  %s709_s2 = inlined_call_operand.hbm [shape: f32[2,256], index: 2, kind: output, shape index: {}]  }
   0x1   :  { %8 = vsyncpa [#allocation8], 0 }
   0x2   :  { %9 = vsyncpa [#allocation6], 0  ;;  %s14_s11 = sshll.u32 %s707_s0, 4  ;;  %s647_s12 = smov [#allocation4]   ;;  %s15_s11 = int_to_ptr.hbm [resolvable:$true] %s14_s11 }
   0x3   :  { %s16_s13 = sshll.u32 %s647_s12, 4  ;;  %s27_s16 = sshll.u32 %s708_s1, 4  ;;  %s17_s13 = int_to_ptr.vmem [resolvable:$true] %s16_s13  ;;  %s28_s16 = int_to_ptr.hbm [resolvable:$true] %s27_s16 }
   0x4   :  { %s648_s17 = smov 256   ;;  %s649_s18 = smov 16  }
   0x5   :  { %22 = dma.hbm_to_vmem [thread:$0]  %s15_s11, 16384, %s17_s13, [#allocation5], %s648_s17, %s648_s17, %s649_s18  }
   0x6   :  { %s650_s19 = smov [#allocation7]   ;;  %s651_s21 = smov 128  }
   0x7   :  { %s29_s20 = sshll.u32 %s650_s19, 4  ;;  %s652_s22 = smov 8   ;;  %s30_s20 = int_to_ptr.vmem [resolvable:$true] %s29_s20 }
   0x8   :  { %35 = dma.hbm_to_vmem [thread:$0]  %s28_s16, 256, %s30_s20, [#allocation8], %s651_s21, %s651_s21, %s652_s22  }
   0x9   :  { %641 = dma.done.wait [#allocation5], 16384  }
   0xa   :  { %642 = vsyncadd [#allocation5], 4294950912 }
   0xb   :  { %643 = dma.done.wait [#allocation8], 256  }
   0xc   :  { %644 = vsyncadd [#allocation8], 4294967040  ;;  %v653_v0 = vmov 0.0   ;;  %v294_v1 = vld [vmem:[#allocation4 + $0x2f0] sm:$0xff]  ;;  %v292_v2 = vld [vmem:[#allocation4 + $0x2e0] sm:$0xff]  ;;  %v654_v7 = vmov -inf  }
   0xd   :  { %48 = vst [vmem:[#allocation2] sm:$0xf] %v653_v0  ;;  %v326_v3 = vld [vmem:[#allocation4 + $0x3f0] sm:$0xff]  ;;  %368 = vmatpush.msra.mxu2 %v294_v1  ;;  %v324_v8 = vld [vmem:[#allocation4 + $0x3e0] sm:$0xff]  ;;  %v295_v0 = vld [vmem:[#allocation4 + $0x2f8] sm:$0xff]  ;;  %vm65_vm0 = vcmask 1043456  }
   0xe   :  { %388 = vmatpush.msra.mxu3 %v326_v3  ;;  %v230_v4 = vld [vmem:[#allocation4 + $0xf0] sm:$0xff]  ;;  %49 = vst [vmem:[#allocation3] sm:$0xf] %v654_v7  ;;  %v228_v9 = vld [vmem:[#allocation4 + $0xe0] sm:$0xff]  ;;  %v327_v1 = vld [vmem:[#allocation4 + $0x3f8] sm:$0xff]  ;;  %vm144_vm1 = vcmask 1041408  }
   0xf   :  { %v262_v5 = vld [vmem:[#allocation4 + $0x1f0] sm:$0xff]  ;;  %328 = vmatpush.msra.mxu0 %v230_v4  ;;  %v260_v10 = vld [vmem:[#allocation4 + $0x1e0] sm:$0xff]  ;;  %369 = vmatpush.msra.mxu2 %v292_v2  ;;  %v293_v4 = vld [vmem:[#allocation4 + $0x2e8] sm:$0xff]  ;;  %vm152_vm2 = vcmask 1041409   ;;  %vm154_vm3 = vcmask 1043459   ;;  %vm156_vm4 = vcmask 1045509  }
  0x10   :  { %v290_v6 = vld [vmem:[#allocation4 + $0x2d0] sm:$0xff]  ;;  %348 = vmatpush.msra.mxu1 %v262_v5  ;;  %389 = vmatpush.msra.mxu3 %v324_v8  ;;  %v288_v13 = vld [vmem:[#allocation4 + $0x2c0] sm:$0xff]  ;;  %v231_v5 = vld [vmem:[#allocation4 + $0xf8] sm:$0xff]  ;;  %vm158_vm5 = vcmask 1047559   ;;  %s655_s0 = smov [#allocation9]   ;;  %s539_s25 = sshll.u32 %s709_s2, 4  ;;  %s540_s25 = int_to_ptr.hbm [resolvable:$true] %s539_s25 }
  0x11   :  { %v322_v11 = vld [vmem:[#allocation4 + $0x3d0] sm:$0xff]  ;;  %329 = vmatpush.msra.mxu0 %v228_v9  ;;  %v320_v15 = vld [vmem:[#allocation4 + $0x3c0] sm:$0xff]  ;;  %370 = vmatpush.msra.mxu2 %v290_v6  ;;  %v263_v6 = vld [vmem:[#allocation4 + $0x1f8] sm:$0xff]  ;;  %s537_s1 = sshll.u32 %s655_s0, 4  ;;  %s538_s1 = int_to_ptr.vmem [resolvable:$true] %s537_s1 }
  0x12   :  { %v226_v12 = vld [vmem:[#allocation4 + $0xd0] sm:$0xff]  ;;  %349 = vmatpush.msra.mxu1 %v260_v10  ;;  %390 = vmatpush.msra.mxu3 %v322_v11  ;;  %v224_v16 = vld [vmem:[#allocation4 + $0xc0] sm:$0xff]  ;;  %v325_v7 = vld [vmem:[#allocation4 + $0x3e8] sm:$0xff] }
  0x13   :  { %v258_v14 = vld [vmem:[#allocation4 + $0x1d0] sm:$0xff]  ;;  %v256_v17 = vld [vmem:[#allocation4 + $0x1c0] sm:$0xff]  ;;  %330 = vmatpush.msra.mxu0 %v226_v12  ;;  %371 = vmatpush.msra.mxu2 %v288_v13  ;;  %v291_v8 = vld [vmem:[#allocation4 + $0x2d8] sm:$0xff] }
  0x14   :  { %350 = vmatpush.msra.mxu1 %v258_v14  ;;  %v286_v18 = vld [vmem:[#allocation4 + $0x2b0] sm:$0xff]  ;;  %391 = vmatpush.msra.mxu3 %v320_v15  ;;  %v284_v22 = vld [vmem:[#allocation4 + $0x2a0] sm:$0xff]  ;;  %v229_v9 = vld [vmem:[#allocation4 + $0xe8] sm:$0xff] }
  0x15   :  { %v318_v19 = vld [vmem:[#allocation4 + $0x3b0] sm:$0xff]  ;;  %331 = vmatpush.msra.mxu0 %v224_v16  ;;  %v316_v23 = vld [vmem:[#allocation4 + $0x3a0] sm:$0xff]  ;;  %372 = vmatpush.msra.mxu2 %v286_v18  ;;  %v261_v10 = vld [vmem:[#allocation4 + $0x1e8] sm:$0xff] }
  0x16   :  { %v222_v20 = vld [vmem:[#allocation4 + $0xb0] sm:$0xff]  ;;  %351 = vmatpush.msra.mxu1 %v256_v17  ;;  %392 = vmatpush.msra.mxu3 %v318_v19  ;;  %v220_v24 = vld [vmem:[#allocation4 + $0xa0] sm:$0xff]  ;;  %v323_v11 = vld [vmem:[#allocation4 + $0x3d8] sm:$0xff] }
  0x17   :  { %v254_v21 = vld [vmem:[#allocation4 + $0x1b0] sm:$0xff]  ;;  %v252_v25 = vld [vmem:[#allocation4 + $0x1a0] sm:$0xff]  ;;  %332 = vmatpush.msra.mxu0 %v222_v20  ;;  %373 = vmatpush.msra.mxu2 %v284_v22  ;;  %v289_v12 = vld [vmem:[#allocation4 + $0x2c8] sm:$0xff] }
  0x18   :  { %352 = vmatpush.msra.mxu1 %v254_v21  ;;  %v282_v26 = vld [vmem:[#allocation4 + $0x290] sm:$0xff]  ;;  %393 = vmatpush.msra.mxu3 %v316_v23  ;;  %v280_v30 = vld [vmem:[#allocation4 + $0x280] sm:$0xff]  ;;  %v227_v13 = vld [vmem:[#allocation4 + $0xd8] sm:$0xff] }
  0x19   :  { %v314_v27 = vld [vmem:[#allocation4 + $0x390] sm:$0xff]  ;;  %333 = vmatpush.msra.mxu0 %v220_v24  ;;  %v312_v31 = vld [vmem:[#allocation4 + $0x380] sm:$0xff]  ;;  %374 = vmatpush.msra.mxu2 %v282_v26  ;;  %v259_v15 = vld [vmem:[#allocation4 + $0x1d8] sm:$0xff] }
  0x1a   :  { %v218_v28 = vld [vmem:[#allocation4 + $0x90] sm:$0xff]  ;;  %353 = vmatpush.msra.mxu1 %v252_v25  ;;  %394 = vmatpush.msra.mxu3 %v314_v27  ;;  %v216_v32 = vld [vmem:[#allocation4 + $0x80] sm:$0xff]  ;;  %v321_v16 = vld [vmem:[#allocation4 + $0x3c8] sm:$0xff] }
  0x1b   :  { %v250_v29 = vld [vmem:[#allocation4 + $0x190] sm:$0xff]  ;;  %v248_v33 = vld [vmem:[#allocation4 + $0x180] sm:$0xff]  ;;  %334 = vmatpush.msra.mxu0 %v218_v28  ;;  %375 = vmatpush.msra.mxu2 %v280_v30  ;;  %v51_v17 = vld [vmem:[#allocation7 + $0x8] sm:$0xff] }
  0x1c   :  { %354 = vmatpush.msra.mxu1 %v250_v29  ;;  %v278_v34 = vld [vmem:[#allocation4 + $0x270] sm:$0xff]  ;;  %395 = vmatpush.msra.mxu3 %v312_v31  ;;  %v276_v38 = vld [vmem:[#allocation4 + $0x260] sm:$0xff]  ;;  %v287_v18 = vld [vmem:[#allocation4 + $0x2b8] sm:$0xff]  ;;  %58 = vst [vmem:[#allocation1 + $0x10] ss:$2 sm:$0xff] %v51_v17 }
  0x1d   :  { %v310_v35 = vld [vmem:[#allocation4 + $0x370] sm:$0xff]  ;;  %335 = vmatpush.msra.mxu0 %v216_v32  ;;  %v308_v39 = vld [vmem:[#allocation4 + $0x360] sm:$0xff]  ;;  %376 = vmatpush.msra.mxu2 %v278_v34  ;;  %v225_v19 = vld [vmem:[#allocation4 + $0xc8] sm:$0xff] }
  0x1e   :  { %v214_v36 = vld [vmem:[#allocation4 + $0x70] sm:$0xff]  ;;  %355 = vmatpush.msra.mxu1 %v248_v33  ;;  %396 = vmatpush.msra.mxu3 %v310_v35  ;;  %v212_v40 = vld [vmem:[#allocation4 + $0x60] sm:$0xff]  ;;  %v257_v20 = vld [vmem:[#allocation4 + $0x1c8] sm:$0xff] }
  0x1f   :  { %v246_v37 = vld [vmem:[#allocation4 + $0x170] sm:$0xff]  ;;  %v244_v41 = vld [vmem:[#allocation4 + $0x160] sm:$0xff]  ;;  %336 = vmatpush.msra.mxu0 %v214_v36  ;;  %377 = vmatpush.msra.mxu2 %v276_v38  ;;  %v319_v21 = vld [vmem:[#allocation4 + $0x3b8] sm:$0xff] }
  0x20   :  { %356 = vmatpush.msra.mxu1 %v246_v37  ;;  %v274_v42 = vld [vmem:[#allocation4 + $0x250] sm:$0xff]  ;;  %397 = vmatpush.msra.mxu3 %v308_v39  ;;  %v272_v46 = vld [vmem:[#allocation4 + $0x240] sm:$0xff]  ;;  %v285_v22 = vld [vmem:[#allocation4 + $0x2a8] sm:$0xff] }
  0x21   :  { %v306_v43 = vld [vmem:[#allocation4 + $0x350] sm:$0xff]  ;;  %337 = vmatpush.msra.mxu0 %v212_v40  ;;  %v304_v47 = vld [vmem:[#allocation4 + $0x340] sm:$0xff]  ;;  %378 = vmatpush.msra.mxu2 %v274_v42  ;;  %v223_v23 = vld [vmem:[#allocation4 + $0xb8] sm:$0xff] }
  0x22   :  { %v210_v44 = vld [vmem:[#allocation4 + $0x50] sm:$0xff]  ;;  %357 = vmatpush.msra.mxu1 %v244_v41  ;;  %398 = vmatpush.msra.mxu3 %v306_v43  ;;  %v208_v48 = vld [vmem:[#allocation4 + $0x40] sm:$0xff]  ;;  %v255_v24 = vld [vmem:[#allocation4 + $0x1b8] sm:$0xff] }
  0x23   :  { %v242_v45 = vld [vmem:[#allocation4 + $0x150] sm:$0xff]  ;;  %v240_v49 = vld [vmem:[#allocation4 + $0x140] sm:$0xff]  ;;  %338 = vmatpush.msra.mxu0 %v210_v44  ;;  %379 = vmatpush.msra.mxu2 %v272_v46  ;;  %v283_v25 = vld [vmem:[#allocation4 + $0x298] sm:$0xff] }
  0x24   :  { %358 = vmatpush.msra.mxu1 %v242_v45  ;;  %v270_v50 = vld [vmem:[#allocation4 + $0x230] sm:$0xff]  ;;  %399 = vmatpush.msra.mxu3 %v304_v47  ;;  %v268_v54 = vld [vmem:[#allocation4 + $0x220] sm:$0xff]  ;;  %v317_v26 = vld [vmem:[#allocation4 + $0x3a8] sm:$0xff] }
  0x25   :  { %v302_v51 = vld [vmem:[#allocation4 + $0x330] sm:$0xff]  ;;  %339 = vmatpush.msra.mxu0 %v208_v48  ;;  %v300_v55 = vld [vmem:[#allocation4 + $0x320] sm:$0xff]  ;;  %380 = vmatpush.msra.mxu2 %v270_v50  ;;  %v221_v27 = vld [vmem:[#allocation4 + $0xa8] sm:$0xff] }
  0x26   :  { %v206_v52 = vld [vmem:[#allocation4 + $0x30] sm:$0xff]  ;;  %359 = vmatpush.msra.mxu1 %v240_v49  ;;  %400 = vmatpush.msra.mxu3 %v302_v51  ;;  %v204_v56 = vld [vmem:[#allocation4 + $0x20] sm:$0xff]  ;;  %v253_v28 = vld [vmem:[#allocation4 + $0x1a8] sm:$0xff] }
  0x27   :  { %v238_v53 = vld [vmem:[#allocation4 + $0x130] sm:$0xff]  ;;  %v236_v57 = vld [vmem:[#allocation4 + $0x120] sm:$0xff]  ;;  %340 = vmatpush.msra.mxu0 %v206_v52  ;;  %381 = vmatpush.msra.mxu2 %v268_v54  ;;  %v281_v29 = vld [vmem:[#allocation4 + $0x288] sm:$0xff] }
  0x28   :  { %360 = vmatpush.msra.mxu1 %v238_v53  ;;  %v266_v58 = vld [vmem:[#allocation4 + $0x210] sm:$0xff]  ;;  %401 = vmatpush.msra.mxu3 %v300_v55  ;;  %v264_v62 = vld [vmem:[#allocation4 + $0x200] sm:$0xff]  ;;  %v315_v30 = vld [vmem:[#allocation4 + $0x398] sm:$0xff] }
  0x29   :  { %v298_v59 = vld [vmem:[#allocation4 + $0x310] sm:$0xff]  ;;  %341 = vmatpush.msra.mxu0 %v204_v56  ;;  %v296_v63 = vld [vmem:[#allocation4 + $0x300] sm:$0xff]  ;;  %382 = vmatpush.msra.mxu2 %v266_v58  ;;  %v219_v31 = vld [vmem:[#allocation4 + $0x98] sm:$0xff] }
  0x2a   :  { %v202_v60 = vld [vmem:[#allocation4 + $0x10] sm:$0xff]  ;;  %361 = vmatpush.msra.mxu1 %v236_v57  ;;  %402 = vmatpush.msra.mxu3 %v298_v59  ;;  %v200_v2 = vld [vmem:[#allocation4] sm:$0xff]  ;;  %v251_v32 = vld [vmem:[#allocation4 + $0x198] sm:$0xff] }
  0x2b   :  { %v234_v61 = vld [vmem:[#allocation4 + $0x110] sm:$0xff]  ;;  %342 = vmatpush.msra.mxu0 %v202_v60  ;;  %v232_v3 = vld [vmem:[#allocation4 + $0x100] sm:$0xff]  ;;  %383 = vmatpush.msra.mxu2 %v264_v62  ;;  %v313_v33 = vld [vmem:[#allocation4 + $0x388] sm:$0xff] }
  0x2c   :  { %362 = vmatpush.msra.mxu1 %v234_v61  ;;  %403 = vmatpush.msra.mxu3 %v296_v63  ;;  %v50_v14 = vld [vmem:[#allocation7] sm:$0xff]  ;;  %v279_v34 = vld [vmem:[#allocation4 + $0x278] sm:$0xff]  ;;  %v217_v35 = vld [vmem:[#allocation4 + $0x88] sm:$0xff] }
  0x2d   :  { %448 = vmatpush.msrb.mxu2 %v295_v0  ;;  %343 = vmatpush.msra.mxu0 %v200_v2  ;;  %54 = vst [vmem:[#allocation1] ss:$2 sm:$0xff] %v50_v14  ;;  %v249_v38 = vld [vmem:[#allocation4 + $0x188] sm:$0xff]  ;;  %v311_v39 = vld [vmem:[#allocation4 + $0x378] sm:$0xff] }
  0x2e   :  { %468 = vmatpush.msrb.mxu3 %v327_v1  ;;  %363 = vmatpush.msra.mxu1 %v232_v3  ;;  %v59_v40 = vld.sshfl [vmem:[#allocation1 + $0x10] sm:$0xff pattern:$0x75316420]  ;;  %v60_v41 = vld.sshfl [vmem:[#allocation1 + $0x18] sm:$0xff pattern:$0x75316420] }
  0x2f   :  { %449 = vmatpush.msrb.mxu2 %v293_v4  ;;  %408 = vmatpush.msrb.mxu0 %v231_v5  ;;  %v80_v44 = vsel %vm65_vm0, %v59_v40, 0.0  ;;  %v87_v45 = vsel %vm65_vm0, %v60_v41, 0.0  ;;  %102 = vst [vmem:[#allocation1 + $0x10] ss:$2 sm:$0xff] %v51_v17  ;;  %v277_v50 = vld [vmem:[#allocation4 + $0x268] sm:$0xff]  ;;  %v215_v51 = vld [vmem:[#allocation4 + $0x78] sm:$0xff] }
  0x30   :  { %428 = vmatpush.msrb.mxu1 %v263_v6  ;;  %469 = vmatpush.msrb.mxu3 %v325_v7  ;;  %v81_v48 = vrot.slane %v80_v44, 4  ;;  %v88_v49 = vrot.slane %v87_v45, 4  ;;  %v247_v52 = vld [vmem:[#allocation4 + $0x178] sm:$0xff]  ;;  %v309_v53 = vld [vmem:[#allocation4 + $0x368] sm:$0xff] }
  0x31   :  { %450 = vmatpush.msrb.mxu2 %v291_v8  ;;  %409 = vmatpush.msrb.mxu0 %v229_v9  ;;  %v275_v57 = vld [vmem:[#allocation4 + $0x258] sm:$0xff]  ;;  %v213_v58 = vld [vmem:[#allocation4 + $0x68] sm:$0xff] }
  0x32   :  { %429 = vmatpush.msrb.mxu1 %v261_v10  ;;  %470 = vmatpush.msrb.mxu3 %v323_v11  ;;  %v82_v56 = vadd.f32 %v81_v48, %v80_v44  ;;  %v89_v59 = vadd.f32 %v88_v49, %v87_v45  ;;  %v245_v60 = vld [vmem:[#allocation4 + $0x168] sm:$0xff]  ;;  %v307_v61 = vld [vmem:[#allocation4 + $0x358] sm:$0xff] }
  0x33   :  { %451 = vmatpush.msrb.mxu2 %v289_v12  ;;  %410 = vmatpush.msrb.mxu0 %v227_v13  ;;  %v273_v1 = vld [vmem:[#allocation4 + $0x248] sm:$0xff] }
  0x34   :  { %430 = vmatpush.msrb.mxu1 %v259_v15  ;;  %471 = vmatpush.msrb.mxu3 %v321_v16  ;;  %v55_v36 = vld.sshfl [vmem:[#allocation1] sm:$0xff pattern:$0x75316420]  ;;  %v56_v37 = vld.sshfl [vmem:[#allocation1 + $0x8] sm:$0xff pattern:$0x75316420] }
  0x35   :  { %452 = vmatpush.msrb.mxu2 %v287_v18  ;;  %411 = vmatpush.msrb.mxu0 %v225_v19  ;;  %v66_v42 = vsel %vm65_vm0, %v55_v36, 0.0  ;;  %v73_v43 = vsel %vm65_vm0, %v56_v37, 0.0  ;;  %98 = vst [vmem:[#allocation1] ss:$2 sm:$0xff] %v50_v14  ;;  %v83_v0 = vrot.slane %v82_v56, 2  ;;  %v90_v2 = vrot.slane %v89_v59, 2 }
  0x36   :  { %431 = vmatpush.msrb.mxu1 %v257_v20  ;;  %472 = vmatpush.msrb.mxu3 %v319_v21  ;;  %v67_v46 = vrot.slane %v66_v42, 4  ;;  %v74_v47 = vrot.slane %v73_v43, 4  ;;  %v103_v9 = vld.sshfl [vmem:[#allocation1 + $0x10] sm:$0xff pattern:$0x75316420] }
  0x37   :  { %453 = vmatpush.msrb.mxu2 %v285_v22  ;;  %412 = vmatpush.msrb.mxu0 %v223_v23  ;;  %v84_v5 = vadd.f32 %v83_v0, %v82_v56  ;;  %v91_v8 = vadd.f32 %v90_v2, %v89_v59  ;;  %v104_v10 = vld.sshfl [vmem:[#allocation1 + $0x18] sm:$0xff pattern:$0x75316420]  ;;  %v123_v18 = vsel %vm65_vm0, %v103_v9, -inf }
  0x38   :  { %432 = vmatpush.msrb.mxu1 %v255_v24  ;;  %473 = vmatpush.msrb.mxu3 %v317_v26  ;;  %v68_v54 = vadd.f32 %v67_v46, %v66_v42  ;;  %v75_v55 = vadd.f32 %v74_v47, %v73_v43  ;;  %v130_v26 = vsel %vm65_vm0, %v104_v10, -inf  ;;  %v137_v46 = vld [vmem:[#allocation2] sm:$0xf]  ;;  %v305_v56 = vld [vmem:[#allocation4 + $0x348] sm:$0xff] }
  0x39   :  { %454 = vmatpush.msrb.mxu2 %v283_v25  ;;  %413 = vmatpush.msrb.mxu0 %v221_v27  ;;  %v85_v13 = vrot.slane %v84_v5, 1  ;;  %v92_v15 = vrot.slane %v91_v8, 1  ;;  %v124_v25 = vrot.slane %v123_v18, 4  ;;  %v265_v10 = vld [vmem:[#allocation4 + $0x208] sm:$0xff] }
  0x3a   :  { %433 = vmatpush.msrb.mxu1 %v253_v28  ;;  %474 = vmatpush.msrb.mxu3 %v315_v30  ;;  %v69_v62 = vrot.slane %v68_v54, 2  ;;  %v76_v63 = vrot.slane %v75_v55, 2  ;;  %v131_v28 = vrot.slane %v130_v26, 4 }
  0x3b   :  { %455 = vmatpush.msrb.mxu2 %v281_v29  ;;  %414 = vmatpush.msrb.mxu0 %v219_v31  ;;  %v86_v21 = vadd.f32 %v85_v13, %v84_v5  ;;  %v93_v23 = vadd.f32 %v92_v15, %v91_v8  ;;  %v125_v31 = vmax.f32 %v123_v18, %v124_v25  ;;  %v267_v5 = vld [vmem:[#allocation4 + $0x218] sm:$0xff]  ;;  %v237_v8 = vld [vmem:[#allocation4 + $0x128] sm:$0xff] }
  0x3c   :  { %434 = vmatpush.msrb.mxu1 %v251_v32  ;;  %475 = vmatpush.msrb.mxu3 %v313_v33  ;;  %v70_v3 = vadd.f32 %v69_v62, %v68_v54  ;;  %v77_v4 = vadd.f32 %v76_v63, %v75_v55  ;;  %v99_v6 = vld.sshfl [vmem:[#allocation1] sm:$0xff pattern:$0x75316420]  ;;  %v100_v7 = vld.sshfl [vmem:[#allocation1 + $0x8] sm:$0xff pattern:$0x75316420] }
  0x3d   :  { %456 = vmatpush.msrb.mxu2 %v279_v34  ;;  %415 = vmatpush.msrb.mxu0 %v217_v35  ;;  %v109_v14 = vsel %vm65_vm0, %v99_v6, -inf  ;;  %v116_v17 = vsel %vm65_vm0, %v100_v7, -inf  ;;  %v143_v32 = vrot.slane %v93_v23, 6  ;;  %v132_v34 = vmax.f32 %v130_v26, %v131_v28  ;;  %v303_v62 = vld [vmem:[#allocation4 + $0x338] sm:$0xff]  ;;  %v301_v6 = vld [vmem:[#allocation4 + $0x328] sm:$0xff] }
  0x3e   :  { %435 = vmatpush.msrb.mxu1 %v249_v38  ;;  %476 = vmatpush.msrb.mxu3 %v311_v39  ;;  %v71_v11 = vrot.slane %v70_v3, 1  ;;  %v78_v12 = vrot.slane %v77_v4, 1  ;;  %v110_v16 = vrot.slane %v109_v14, 4  ;;  %v117_v22 = vrot.slane %v116_v17, 4  ;;  %v207_v63 = vld [vmem:[#allocation4 + $0x38] sm:$0xff]  ;;  %v205_v7 = vld [vmem:[#allocation4 + $0x28] sm:$0xff] }
  0x3f   :  { %457 = vmatpush.msrb.mxu2 %v277_v50  ;;  %416 = vmatpush.msrb.mxu0 %v215_v51  ;;  %v126_v36 = vrot.slane %v125_v31, 2  ;;  %v146_v38 = vsel %vm144_vm1, %v86_v21, %v143_v32  ;;  %v133_v40 = vrot.slane %v132_v34, 2  ;;  %v211_v50 = vld [vmem:[#allocation4 + $0x58] sm:$0xff]  ;;  %v201_v18 = vld [vmem:[#allocation4 + $0x8] sm:$0xff] }
  0x40   :  { %436 = vmatpush.msrb.mxu1 %v247_v52  ;;  %477 = vmatpush.msrb.mxu3 %v309_v53  ;;  %v72_v19 = vadd.f32 %v71_v11, %v70_v3  ;;  %v79_v20 = vadd.f32 %v78_v12, %v77_v4  ;;  %v111_v24 = vmax.f32 %v109_v14, %v110_v16  ;;  %v151_v41 = vrot.slane %v146_v38, 7  ;;  %v243_v51 = vld [vmem:[#allocation4 + $0x158] sm:$0xff] }
  0x41   :  { %458 = vmatpush.msrb.mxu2 %v275_v57  ;;  %417 = vmatpush.msrb.mxu0 %v213_v58  ;;  %v118_v27 = vmax.f32 %v116_v17, %v117_v22  ;;  %v127_v43 = vmax.f32 %v125_v31, %v126_v36  ;;  %v134_v45 = vmax.f32 %v132_v34, %v133_v40  ;;  %v271_v52 = vld [vmem:[#allocation4 + $0x238] sm:$0xff]  ;;  %v209_v57 = vld [vmem:[#allocation4 + $0x48] sm:$0xff] }
  0x42   :  { %437 = vmatpush.msrb.mxu1 %v245_v60  ;;  %478 = vmatpush.msrb.mxu3 %v307_v61  ;;  %v142_v29 = vrot.slane %v79_v20, 6  ;;  %v112_v30 = vrot.slane %v111_v24, 2  ;;  %v241_v58 = vld [vmem:[#allocation4 + $0x148] sm:$0xff]  ;;  %v239_v4 = vld [vmem:[#allocation4 + $0x138] sm:$0xff] }
  0x43   :  { %459 = vmatpush.msrb.mxu2 %v273_v1  ;;  %v119_v33 = vrot.slane %v118_v27, 2  ;;  %v128_v48 = vrot.slane %v127_v43, 1  ;;  %v135_v54 = vrot.slane %v134_v45, 1  ;;  %418 = vmatpush.msrb.mxu0 %v211_v50  ;;  %v269_v61 = vld [vmem:[#allocation4 + $0x228] sm:$0xff]  ;;  %v299_v11 = vld [vmem:[#allocation4 + $0x318] sm:$0xff] }
  0x44   :  { %v113_v35 = vmax.f32 %v111_v24, %v112_v30  ;;  %v145_v37 = vsel %vm144_vm1, %v72_v19, %v142_v29  ;;  %438 = vmatpush.msrb.mxu1 %v243_v51  ;;  %479 = vmatpush.msrb.mxu3 %v305_v56  ;;  %v203_v15 = vld [vmem:[#allocation4 + $0x18] sm:$0xff]  ;;  %v297_v17 = vld [vmem:[#allocation4 + $0x308] sm:$0xff] }
  0x45   :  { %v120_v39 = vmax.f32 %v118_v27, %v119_v33  ;;  %v153_v47 = vsel %vm152_vm2, %v151_v41, %v145_v37  ;;  %460 = vmatpush.msrb.mxu2 %v271_v52  ;;  %v129_v0 = vmax.f32 %v127_v43, %v128_v48  ;;  %v136_v1 = vmax.f32 %v134_v45, %v135_v54  ;;  %v235_v16 = vld [vmem:[#allocation4 + $0x118] sm:$0xff]  ;;  %v233_v19 = vld [vmem:[#allocation4 + $0x108] sm:$0xff] }
  0x46   :  { %v114_v42 = vrot.slane %v113_v35, 1  ;;  %v155_v49 = vsel %vm154_vm3, %v151_v41, %v153_v47  ;;  %419 = vmatpush.msrb.mxu0 %v209_v57  ;;  %439 = vmatpush.msrb.mxu1 %v241_v58  ;;  %v163_v21 = vld [vmem:[#allocation3] sm:$0xf] }
  0x47   :  { %v121_v44 = vrot.slane %v120_v39, 1  ;;  %v157_v55 = vsel %vm156_vm4, %v151_v41, %v155_v49  ;;  %461 = vmatpush.msrb.mxu2 %v269_v61  ;;  %480 = vmatpush.msrb.mxu3 %v303_v62  ;;  %v169_v9 = vrot.slane %v136_v1, 6 }
  0x48   :  { %v115_v59 = vmax.f32 %v113_v35, %v114_v42  ;;  %v159_v60 = vsel %vm158_vm5, %v151_v41, %v157_v55  ;;  %420 = vmatpush.msrb.mxu0 %v207_v63  ;;  %440 = vmatpush.msrb.mxu1 %v239_v4 }
  0x49   :  { %v122_v53 = vmax.f32 %v120_v39, %v121_v44  ;;  %v161_v2 = vadd.f32 %v159_v60, %v137_v46  ;;  %462 = vmatpush.msrb.mxu2 %v267_v5  ;;  %481 = vmatpush.msrb.mxu3 %v301_v6  ;;  %v171_v13 = vsel %vm144_vm1, %v129_v0, %v169_v9 }
  0x4a   :  { %421 = vmatpush.msrb.mxu0 %v205_v7  ;;  %441 = vmatpush.msrb.mxu1 %v237_v8  ;;  %v174_v14 = vrot.slane %v171_v13, 7 }
  0x4b   :  { %v168_v3 = vrot.slane %v122_v53, 6  ;;  %162 = vst [vmem:[#allocation2] sm:$0xf] %v161_v2  ;;  %463 = vmatpush.msrb.mxu2 %v265_v10  ;;  %482 = vmatpush.msrb.mxu3 %v299_v11 }
  0x4c   :  { %422 = vmatpush.msrb.mxu0 %v203_v15  ;;  %442 = vmatpush.msrb.mxu1 %v235_v16 }
  0x4d   :  { %v170_v12 = vsel %vm144_vm1, %v115_v59, %v168_v3  ;;  %483 = vmatpush.msrb.mxu3 %v297_v17 }
  0x4e   :  { %v175_v20 = vsel %vm152_vm2, %v174_v14, %v170_v12  ;;  %423 = vmatpush.msrb.mxu0 %v201_v18  ;;  %443 = vmatpush.msrb.mxu1 %v233_v19 }
  0x4f   :  { %v176_v22 = vsel %vm154_vm3, %v174_v14, %v175_v20 }
  0x50   :  { %v177_v23 = vsel %vm156_vm4, %v174_v14, %v176_v22 }
  0x51   :  { %v178_v25 = vsel %vm158_vm5, %v174_v14, %v177_v23 }
  0x52   :  { %v185_v24 = vld [vmem:[#allocation2] sm:$0xf]  ;;  %v180_v27 = vmax.f32 %v163_v21, %v178_v25 }
  0x53   :  { %v186_v26 = vmul.f32 0.25, %v185_v24 }
  0x54   :  { %181 = vst [vmem:[#allocation3] sm:$0xf] %v180_v27 }
  0x55   :  { %189 = vst [vmem:[#allocation1] ss:$4 sm:$0xff] %v186_v26 }
  0x5b   :  { %v187_v30 = vld [vmem:[#allocation3] sm:$0xf] }
  0x5c   :  { %v190_v28 = vld.sshfl [vmem:[#allocation1] sm:$0xff pattern:$0x73625140]  ;;  %v191_v29 = vld.sshfl [vmem:[#allocation1 + $0x8] sm:$0xff pattern:$0x73625140] }
  0x5d   :  { %344 = vmatmul.f32.vlgmr.msra.gmra.mxu0 %v190_v28  ;;  %364 = vmatmul.f32.vlgmr.msra.gmra.mxu1 %v191_v29  ;;  %195 = vst [vmem:[#allocation1] ss:$4 sm:$0xff] %v187_v30 }
  0x64   :  { %v196_v31 = vld.sshfl [vmem:[#allocation1] sm:$0xff pattern:$0x73625140]  ;;  %v197_v32 = vld.sshfl [vmem:[#allocation1 + $0x8] sm:$0xff pattern:$0x73625140] }
  0x65   :  { %424 = vmatmul.f32.vlgmr.msrb.gmra.mxu0 %v190_v28  ;;  %444 = vmatmul.f32.vlgmr.msrb.gmra.mxu1 %v191_v29 }
  0x66   :  { %384 = vmatmul.f32.vlgmr.msra.gmra.mxu2 %v196_v31  ;;  %404 = vmatmul.f32.vlgmr.msra.gmra.mxu3 %v197_v32 }
  0x6e   :  { %464 = vmatmul.f32.vlgmr.msrb.gmra.mxu2 %v196_v31  ;;  %484 = vmatmul.f32.vlgmr.msrb.gmra.mxu3 %v197_v32 }
  0xda   :  { %v345_v33 = vpop.f32.mrf.mxu0  ;;  %v365_v34 = vpop.f32.mrf.mxu1 }
  0xdb   :  { %v366_v35 = vadd.f32 %v365_v34, %v345_v33 }
  0xe2   :  { %v425_v39 = vpop.f32.mrf.mxu0  ;;  %v445_v40 = vpop.f32.mrf.mxu1 }
  0xe3   :  { %v446_v43 = vadd.f32 %v445_v40, %v425_v39 }
  0xe9   :  { %v385_v36 = vpop.f32.mrf.mxu2  ;;  %v405_v37 = vpop.f32.mrf.mxu3 }
  0xea   :  { %v386_v38 = vadd.f32 %v385_v36, %v366_v35 }
  0xec   :  { %v406_v41 = vadd.f32 %v405_v37, %v386_v38 }
  0xee   :  { %v550_v42 = vmul.f32 -1.442695, %v406_v41 }
  0xf0   :  { %561 = vpow2.f32 %v550_v42 }
  0xf1   :  { %v465_v44 = vpop.f32.mrf.mxu2  ;;  %v485_v45 = vpop.f32.mrf.mxu3 }
  0xf2   :  { %v466_v46 = vadd.f32 %v465_v44, %v446_v43 }
  0xf4   :  { %v486_v47 = vadd.f32 %v485_v45, %v466_v46 }
  0xf6   :  { %v562_v48 = vpop.eup %561  ;;  %v551_v49 = vmul.f32 -1.442695, %v486_v47 }
  0xf7   :  { %v494_v50 = vadd.f32 1.0, %v562_v48 }
  0xf8   :  { %563 = vpow2.f32 %v551_v49 }
  0xf9   :  { %565 = vrcp.f32 %v494_v50  ;;  %vm501_vm8 = vweird.f32 %v494_v50  ;;  %v507_v0 = vand.u32 2147483648, %v494_v50  ;;  %v505_v2 = vand.u32 2147483647, %v494_v50 }
  0xfb   :  { %v508_v7 = vor.u32 1.1754944e-38, %v507_v0  ;;  %vm506_vm13 = vcmp.eq.f32.partialorder %v505_v2, 8.507059e+37 }
  0xfe   :  { %v564_v51 = vpop.eup %563 }
  0xff   :  { %v566_v52 = vpop.eup %565  ;;  %v495_v53 = vadd.f32 1.0, %v564_v51 }
 0x100   :  { %v497_v54 = vmul.f32 %v566_v52, %v494_v50  ;;  %vm502_vm6 = vweird.f32 %v566_v52 }
 0x101   :  { %567 = vrcp.f32 %v495_v53  ;;  %v522_v60 = vand.u32 2147483648, %v495_v53  ;;  %v520_v63 = vand.u32 2147483647, %v495_v53  ;;  %vm697_vm9 = vmor %vm501_vm8, %vm502_vm6  ;;  %vm516_vm10 = vweird.f32 %v495_v53 }
 0x102   :  { %v498_v55 = vsub.f32 1.0, %v497_v54 }
 0x103   :  { %v523_v4 = vor.u32 1.1754944e-38, %v522_v60  ;;  %vm521_vm12 = vcmp.eq.f32.partialorder %v520_v63, 8.507059e+37 }
 0x104   :  { %v499_v58 = vmul.f32 %v566_v52, %v498_v55 }
 0x106   :  { %v500_v61 = vadd.f32 %v566_v52, %v499_v58 }
 0x107   :  { %v568_v56 = vpop.eup %567 }
 0x108   :  { %v512_v57 = vmul.f32 %v568_v56, %v495_v53  ;;  %vm517_vm7 = vweird.f32 %v568_v56  ;;  %v504_v5 = vsel %vm697_vm9, %v566_v52, %v500_v61 }
 0x109   :  { %vm518_vm11 = vmor %vm516_vm10, %vm517_vm7  ;;  %v509_v10 = vsel %vm506_vm13, %v508_v7, %v504_v5 }
 0x10a   :  { %v513_v59 = vsub.f32 1.0, %v512_v57 }
 0x10c   :  { %v514_v62 = vmul.f32 %v568_v56, %v513_v59 }
 0x10e   :  { %v515_v3 = vadd.f32 %v568_v56, %v514_v62 }
 0x110   :  { %v519_v6 = vsel %vm518_vm11, %v568_v56, %v515_v3 }
 0x111   :  { %v524_v8 = vsel %vm521_vm12, %v523_v4, %v519_v6 }
 0x112   :  { %v528_v9 = vrot.slane %v524_v8, 6 }
 0x114   :  { %v529_v11 = vsel %vm144_vm1, %v509_v10, %v528_v9 }
 0x115   :  { %531 = vst [vmem:[#allocation9] sm:$0xf] %v529_v11 }
 0x116   :  { %542 = dma.vmem_to_hbm [thread:$0]  %s538_s1, 64, %s540_s25, [#allocation6]  }
 0x117   :  { %645 = dma.done.wait [#allocation6], 64  }
 0x118   :  { %646 = vsyncadd [#allocation6], 4294967232 }
 0x119   :  { %547 = vsyncpa [#allocation5], 1 }
 0x11a   :  { %548 = vsyncpa [#allocation8], 1 }
 0x11b   :  { %549 = vsyncpa [#allocation6], 1 }

</bundles_post_ra>
